<compile_context>
chip_gen: v7x
topology: tpu7x:2x2x1
jax: 0.10.0
libtpu: 0.0.40
codegen_flags: <defaults>
</compile_context>

<pallas_src>
import functools

import jax
import jax.numpy as jnp
from jax.experimental import pallas as pl
from jax.experimental.pallas import tpu as pltpu

_MIB = 1024 * 1024


def _round_up(x, n):
    return ((x + n - 1) // n) * n


def _cdiv(a, b):
    return -(-a // b)


def _vmem_capacity_bytes():
    """Best-effort per-core VMEM capacity query (falls back to device_kind)."""
    try:
        info = pltpu.get_tpu_info()
        cap = int(getattr(info, "vmem_capacity_bytes", 0) or 0)
        if cap > 0:
            return cap
    except Exception:
        pass
    try:
        kind = jax.devices()[0].device_kind.lower()
    except Exception:
        kind = ""
    if "v7" in kind:
        return 64 * _MIB          # v7x: 64 MiB per TensorCore
    return 128 * _MIB             # v5e / v6e


def _glu_ffn_kernel(x_ref, w1_ref, b1_ref, w3_ref, b3_ref, w2_ref, b2_ref,
                    o_ref, acc_ref, *, activation="silu"):
    """Grid point (i, j): tile i of M tokens, hidden chunk j.

    acc_ref (f32 VMEM scratch, (bm, out_p)) accumulates the down-projection
    across hidden chunks; b2 is added exactly once in the finalize branch.
    """
    j = pl.program_id(1)

    @pl.when(j == 0)
    def _init():
        acc_ref[...] = jnp.zeros_like(acc_ref)

    x = x_ref[...]

    # Gate branch:   h1 = x @ W1[:, chunk j] + b1[chunk j]   (f32 accumulate)
    h1 = jnp.dot(x, w1_ref[...], preferred_element_type=jnp.float32) + b1_ref[...]
    # Linear branch: h3 = x @ W3[:, chunk j] + b3[chunk j]
    h3 = jnp.dot(x, w3_ref[...], preferred_element_type=jnp.float32) + b3_ref[...]

    if activation == "silu":
        g = h1 * jax.nn.sigmoid(h1)        # sigmoid -> EUP (free slot vs MXU)
    else:                                  # 'relu'
        g = jnp.maximum(h1, 0.0)

    h = (g * h3).astype(w2_ref.dtype)

    # Partial down-projection for this hidden chunk, accumulated in f32.
    acc_ref[...] += jnp.dot(h, w2_ref[...], preferred_element_type=jnp.float32)

    @pl.when(j == pl.num_programs(1) - 1)
    def _finalize():
        o_ref[...] = (acc_ref[...] + b2_ref[...]).astype(o_ref.dtype)


def prepare_glu_ffn_params(w1, b1, w3, b3, w2, b2, *, compute_dtype=jnp.bfloat16):
    """Pad weights to 128-multiples and cast to the MXU dtype ONCE (hoisted out
    of the per-call forward path).  Weight layout is (in_features, out_features)
    == PyTorch W.T, numerically identical to nn.Linear."""
    dim, hidden = w1.shape
    out_dim = w2.shape[1]
    dim_p = _round_up(dim, 128)
    hid_p = _round_up(hidden, 128)
    out_p = _round_up(out_dim, 128)

    w1p = jnp.pad(w1, ((0, dim_p - dim), (0, hid_p - hidden))).astype(compute_dtype)
    w3p = jnp.pad(w3, ((0, dim_p - dim), (0, hid_p - hidden))).astype(compute_dtype)
    w2p = jnp.pad(w2, ((0, hid_p - hidden), (0, out_p - out_dim))).astype(compute_dtype)
    # Biases kept in f32 (added onto the f32 accumulator).
    b1p = jnp.pad(b1.astype(jnp.float32), (0, hid_p - hidden)).reshape(1, hid_p)
    b3p = jnp.pad(b3.astype(jnp.float32), (0, hid_p - hidden)).reshape(1, hid_p)
    b2p = jnp.pad(b2.astype(jnp.float32), (0, out_p - out_dim)).reshape(1, out_p)
    return (w1p, b1p, w3p, b3p, w2p, b2p)


@functools.partial(jax.jit,
                   static_argnames=("out_dim", "block_m", "block_h", "activation"))
def glu_feed_forward_padded(x, w1p, b1p, w3p, b3p, w2p, b2p, *, out_dim,
                            block_m=1024, block_h=256, activation="silu"):
    """x: (batch, seq, dim) -> (batch, seq, out_dim).

    Weights must already be padded / cast via prepare_glu_ffn_params (that
    traffic is hoisted out of the per-call path)."""
    batch, seq, dim = x.shape
    dim_p, hid_p = w1p.shape
    out_p = w2p.shape[1]
    m = batch * seq
    out_dtype = x.dtype
    compute_dtype = w1p.dtype

    wsize = jnp.dtype(compute_dtype).itemsize
    osize = jnp.dtype(out_dtype).itemsize

    # ---- per-generation VMEM budget -----------------------------------------
    cap = _vmem_capacity_bytes()
    if cap > 96 * _MIB:                       # v5e / v6e: 128 MiB physical
        vmem_limit = 100 * _MIB
    else:                                     # v7x: 64 MiB per TensorCore
        vmem_limit = min(cap, 64 * _MIB) - 8 * _MIB
    budget = vmem_limit - 4 * _MIB            # headroom for compiler internals

    # ---- hidden tile ---------------------------------------------------------
    # bh only sets the weight-block VMEM footprint (the total weight HBM bytes
    # per M tile are fixed), so keep it modest -- unless the whole weight set
    # fits comfortably, in which case collapse the hidden axis (bh = hid_p):
    # the weight block index is then constant for the whole grid and the
    # weights are fetched from HBM exactly once.
    full_weight_db = 2 * wsize * (2 * dim_p * hid_p + hid_p * out_p)
    if full_weight_db <= budget // 2:
        bh = hid_p
    else:
        bh = 128                              # 128 always divides hid_p
        target = max(128, block_h)
        d = 256
        while d <= hid_p:
            if hid_p % d == 0 and d <= target:
                bh = d
            d += 128

    # ---- M tile: the primary knob (sets weight re-read traffic) --------------
    num_m_tiles = max(1, _cdiv(m, block_m))
    if num_m_tiles == 1 and m >= 512:
        num_m_tiles = 2                       # keep both v7x TensorCores busy
    sub_align = 128 if m >= 256 else 8
    bm = min(_round_up(_cdiv(m, num_m_tiles), sub_align), _round_up(m, 8))

    def vmem_usage(bm_, bh_):
        use = 2 * bm_ * dim_p * wsize                       # x blocks (x2 buffers)
        use += 2 * (2 * dim_p * bh_ + bh_ * out_p) * wsize  # w1 / w3 / w2 blocks
        use += (4 * bh_ + 2 * out_p) * 4                    # bias blocks (f32)
        use += 2 * bm_ * out_p * osize                      # output blocks
        use += bm_ * out_p * 4                              # f32 accumulator
        use += 3 * bm_ * bh_ * 4                            # h1 / h3 / h f32 temps
        return use

    while bm > 8 and vmem_usage(bm, bh) > budget:
        if bm > 128:
            bm -= 128
        else:
            bm = max(8, bm // 2)
    # TODO(synk): add a third grid axis over out_dim for very large out_p so the
    # f32 accumulator / w2 block stay bounded instead of shrinking bm.

    m_p = _round_up(m, bm)
    grid = (m_p // bm, hid_p // bh)

    # ---- pad x only (weights were pre-padded) --------------------------------
    x2d = x.reshape(m, dim)
    x2d = jnp.pad(x2d, ((0, m_p - m), (0, dim_p - dim))).astype(compute_dtype)

    # ---- truthful cost estimate (weights re-read once per M tile) ------------
    num_m = m_p // bm
    num_h = hid_p // bh
    weight_bytes = wsize * (2 * dim_p * hid_p + hid_p * out_p)
    weight_reads = 1 if num_h == 1 else num_m
    cost = pl.CostEstimate(
        flops=int(2 * m * dim_p * hid_p * 2 + 2 * m * hid_p * out_p),
        transcendentals=int(m * hid_p),
        bytes_accessed=int(wsize * m_p * dim_p            # x read once
                           + osize * m_p * out_p          # output written once
                           + weight_reads * weight_bytes  # weight (re-)streams
                           + 4 * (2 * hid_p + out_p)),    # biases
    )

    out2d = pl.pallas_call(
        functools.partial(_glu_ffn_kernel, activation=activation),
        out_shape=jax.ShapeDtypeStruct((m_p, out_p), out_dtype),
        grid_spec=pltpu.PrefetchScalarGridSpec(
            num_scalar_prefetch=0,
            grid=grid,
            in_specs=[
                # x tile: block over tokens, full (padded) feature dim; constant
                # across the hidden axis -> not re-DMA'd per j.
                pl.BlockSpec((bm, dim_p), lambda i, j: (i, 0)),
                # w1 / b1 blocked over hidden chunks.
                pl.BlockSpec((dim_p, bh), lambda i, j: (0, j)),
                pl.BlockSpec((1, bh), lambda i, j: (0, j)),
                # w3 / b3 blocked over hidden chunks.
                pl.BlockSpec((dim_p, bh), lambda i, j: (0, j)),
                pl.BlockSpec((1, bh), lambda i, j: (0, j)),
                # w2: hidden-chunk rows, full out_dim columns.
                pl.BlockSpec((bh, out_p), lambda i, j: (j, 0)),
                # b2: constant, added once in the finalize branch.
                pl.BlockSpec((1, out_p), lambda i, j: (0, 0)),
            ],
            out_specs=pl.BlockSpec((bm, out_p), lambda i, j: (i, 0)),
            scratch_shapes=[pltpu.VMEM((bm, out_p), jnp.float32)],
        ),
        compiler_params=pltpu.CompilerParams(
            dimension_semantics=("parallel", "arbitrary"),
            vmem_limit_bytes=int(vmem_limit),
        ),
        cost_estimate=cost,
    )(x2d, w1p, b1p, w3p, b3p, w2p, b2p)

    return out2d[:m, :out_dim].reshape(batch, seq, out_dim)


def glu_feed_forward(x, w1, b1, w3, b3, w2, b2, *, compute_dtype=jnp.bfloat16,
                     block_m=1024, block_h=256, activation="silu"):
    """One-shot convenience wrapper (pads/casts weights per call).  For repeated
    forward passes call prepare_glu_ffn_params once and reuse its result."""
    params = prepare_glu_ffn_params(w1, b1, w3, b3, w2, b2,
                                    compute_dtype=compute_dtype)
    return glu_feed_forward_padded(x, *params, out_dim=w2.shape[1],
                                   block_m=block_m, block_h=block_h,
                                   activation=activation)


def _reference(x, w1, b1, w3, b3, w2, b2):
    """Pure-JAX f32 reference mirroring the PyTorch forward (act='silu')."""
    h1 = x @ w1 + b1
    h3 = x @ w3 + b3
    return (h1 * jax.nn.sigmoid(h1) * h3) @ w2 + b2


if __name__ == "__main__":
    # Small shapes consistent with the module.
    batch, seq = 2, 8
    dim, hidden_dim, out_dim = 32, 64, 32
    dtype = jnp.float32

    key = jax.random.PRNGKey(0)
    kx, k1, kb1, k3, kb3, k2, kb2 = jax.random.split(key, 7)

    x = jax.random.normal(kx, (batch, seq, dim), dtype=dtype)

    # Parameters stored as (in, out) == PyTorch W.T (numerically identical).
    w1 = jax.random.normal(k1, (dim, hidden_dim), dtype=dtype) * (1.0 / jnp.sqrt(dim))
    b1 = jax.random.normal(kb1, (hidden_dim,), dtype=dtype) * 0.01
    w3 = jax.random.normal(k3, (dim, hidden_dim), dtype=dtype) * (1.0 / jnp.sqrt(dim))
    b3 = jax.random.normal(kb3, (hidden_dim,), dtype=dtype) * 0.01
    w2 = jax.random.normal(k2, (hidden_dim, out_dim), dtype=dtype) * (1.0 / jnp.sqrt(hidden_dim))
    b2 = jax.random.normal(kb2, (out_dim,), dtype=dtype) * 0.01

    ref = _reference(x, w1, b1, w3, b3, w2, b2)

    # Preferred path: pad/cast the weights once (hoisted), reuse across calls.
    params_bf16 = prepare_glu_ffn_params(w1, b1, w3, b3, w2, b2,
                                         compute_dtype=jnp.bfloat16)
    out = glu_feed_forward_padded(x, *params_bf16, out_dim=out_dim)
    out = jax.block_until_ready(out)
    assert out.shape == (batch, seq, out_dim)
    assert jnp.allclose(out, ref, atol=5e-2, rtol=5e-2), \
        "bf16 kernel mismatch vs reference"

    # f32 MXU path for a tight numerical check of the kernel structure.
    params_f32 = prepare_glu_ffn_params(w1, b1, w3, b3, w2, b2,
                                        compute_dtype=jnp.float32)
    out_f32 = glu_feed_forward_padded(x, *params_f32, out_dim=out_dim)
    out_f32 = jax.block_until_ready(out_f32)
    assert jnp.allclose(out_f32, ref, atol=1e-5, rtol=1e-5), \
        "f32 kernel mismatch vs reference"

    print("KERNEL_OK")
</pallas_src>

<mosaic_0001>
module attributes {stable_mosaic.version = 11 : i64} {
  func.func @_glu_ffn_kernel(%arg0: i32, %arg1: i32, %arg2: memref<16x128xbf16, #tpu.memory_space<vmem>>, %arg3: memref<128x128xbf16, #tpu.memory_space<vmem>>, %arg4: memref<1x128xf32, #tpu.memory_space<vmem>>, %arg5: memref<128x128xbf16, #tpu.memory_space<vmem>>, %arg6: memref<1x128xf32, #tpu.memory_space<vmem>>, %arg7: memref<128x128xbf16, #tpu.memory_space<vmem>>, %arg8: memref<1x128xf32, #tpu.memory_space<vmem>>, %arg9: memref<16x128xf32, #tpu.memory_space<vmem>>, %arg10: memref<16x128xf32, #tpu.memory_space<vmem>>) attributes {dimension_semantics = [#tpu.dimension_semantics<parallel>, #tpu.dimension_semantics<arbitrary>], iteration_bounds = array<i64: 1, 1>, scalar_prefetch = 0 : i64, scratch_operands = 1 : i64, tpu.core_type = #tpu.core_type<tc>, window_params = [{transform_indices = @transform_0, window_bounds = array<i64: 16, 128>}, {transform_indices = @transform_1, window_bounds = array<i64: 128, 128>}, {transform_indices = @transform_2, window_bounds = array<i64: 1, 128>}, {transform_indices = @transform_3, window_bounds = array<i64: 128, 128>}, {transform_indices = @transform_4, window_bounds = array<i64: 1, 128>}, {transform_indices = @transform_5, window_bounds = array<i64: 128, 128>}, {pipeline_mode = #tpu.pipeline_mode<synchronous>, transform_indices = @transform_6, window_bounds = array<i64: 1, 128>}, {transform_indices = @transform_7, window_bounds = array<i64: 16, 128>}]} {
    %c0_i32 = arith.constant 0 : i32
    %0 = arith.cmpi eq, %arg1, %c0_i32 : i32
    %1 = arith.extui %0 : i1 to i32
    %c0_i32_0 = arith.constant 0 : i32
    %2 = arith.cmpi ne, %1, %c0_i32_0 : i32
    scf.if %2 {
      %cst_21 = arith.constant 0.000000e+00 : f32
      %30 = vector.broadcast %cst_21 : f32 to vector<16x128xf32>
      %c0_22 = arith.constant 0 : index
      %c0_23 = arith.constant 0 : index
      %31 = vector.load %arg10[%c0_22, %c0_23] : memref<16x128xf32, #tpu.memory_space<vmem>>, vector<16x128xf32>
      tpu.vector_store %arg10[%c0_22, %c0_23], %30 {strides = array<i32>} : memref<16x128xf32, #tpu.memory_space<vmem>>, vector<16x128xf32>,
    } else {
    }
    %c0 = arith.constant 0 : index
    %c0_1 = arith.constant 0 : index
    %3 = vector.load %arg2[%c0, %c0_1] : memref<16x128xbf16, #tpu.memory_space<vmem>>, vector<16x128xbf16>
    %c0_2 = arith.constant 0 : index
    %c0_3 = arith.constant 0 : index
    %4 = vector.load %arg3[%c0_2, %c0_3] : memref<128x128xbf16, #tpu.memory_space<vmem>>, vector<128x128xbf16>
    %cst = arith.constant dense<0.000000e+00> : vector<16x128xf32>
    %5 = tpu.matmul %3, %4, %cst {dimension_numbers = #tpu.dot_dimension_numbers<[1], [0], [0], [1], [0, 0, 1, 1], [], []>} : vector<16x128xbf16>, vector<128x128xbf16>, vector<16x128xf32> -> vector<16x128xf32>
    %c0_4 = arith.constant 0 : index
    %c0_5 = arith.constant 0 : index
    %6 = vector.load %arg4[%c0_4, %c0_5] : memref<1x128xf32, #tpu.memory_space<vmem>>, vector<1x128xf32>
    %7 = vector.broadcast %6 : vector<1x128xf32> to vector<16x128xf32>
    %8 = arith.addf %5, %7 : vector<16x128xf32>
    %c0_6 = arith.constant 0 : index
    %c0_7 = arith.constant 0 : index
    %9 = vector.load %arg5[%c0_6, %c0_7] : memref<128x128xbf16, #tpu.memory_space<vmem>>, vector<128x128xbf16>
    %cst_8 = arith.constant dense<0.000000e+00> : vector<16x128xf32>
    %10 = tpu.matmul %3, %9, %cst_8 {dimension_numbers = #tpu.dot_dimension_numbers<[1], [0], [0], [1], [0, 0, 1, 1], [], []>} : vector<16x128xbf16>, vector<128x128xbf16>, vector<16x128xf32> -> vector<16x128xf32>
    %c0_9 = arith.constant 0 : index
    %c0_10 = arith.constant 0 : index
    %11 = vector.load %arg6[%c0_9, %c0_10] : memref<1x128xf32, #tpu.memory_space<vmem>>, vector<1x128xf32>
    %12 = vector.broadcast %11 : vector<1x128xf32> to vector<16x128xf32>
    %13 = arith.addf %10, %12 : vector<16x128xf32>
    %14 = arith.negf %8 : vector<16x128xf32>
    %15 = math.exp %14 : vector<16x128xf32>
    %cst_11 = arith.constant 1.000000e+00 : f32
    %16 = vector.broadcast %cst_11 : f32 to vector<16x128xf32>
    %17 = arith.addf %16, %15 : vector<16x128xf32>
    %18 = arith.divf %16, %17 : vector<16x128xf32>
    %19 = arith.mulf %8, %18 : vector<16x128xf32>
    %20 = arith.mulf %19, %13 : vector<16x128xf32>
    %21 = arith.truncf %20 : vector<16x128xf32> to vector<16x128xbf16>
    %c0_12 = arith.constant 0 : index
    %c0_13 = arith.constant 0 : index
    %22 = vector.load %arg10[%c0_12, %c0_13] : memref<16x128xf32, #tpu.memory_space<vmem>>, vector<16x128xf32>
    %c0_14 = arith.constant 0 : index
    %c0_15 = arith.constant 0 : index
    %23 = vector.load %arg7[%c0_14, %c0_15] : memref<128x128xbf16, #tpu.memory_space<vmem>>, vector<128x128xbf16>
    %cst_16 = arith.constant dense<0.000000e+00> : vector<16x128xf32>
    %24 = tpu.matmul %21, %23, %cst_16 {dimension_numbers = #tpu.dot_dimension_numbers<[1], [0], [0], [1], [0, 0, 1, 1], [], []>} : vector<16x128xbf16>, vector<128x128xbf16>, vector<16x128xf32> -> vector<16x128xf32>
    %25 = arith.addf %22, %24 : vector<16x128xf32>
    %c0_17 = arith.constant 0 : index
    %c0_18 = arith.constant 0 : index
    %26 = vector.load %arg10[%c0_17, %c0_18] : memref<16x128xf32, #tpu.memory_space<vmem>>, vector<16x128xf32>
    tpu.vector_store %arg10[%c0_17, %c0_18], %25 {strides = array<i32>} : memref<16x128xf32, #tpu.memory_space<vmem>>, vector<16x128xf32>,
    %c0_i32_19 = arith.constant 0 : i32
    %27 = arith.cmpi eq, %arg1, %c0_i32_19 : i32
    %28 = arith.extui %27 : i1 to i32
    %c0_i32_20 = arith.constant 0 : i32
    %29 = arith.cmpi ne, %28, %c0_i32_20 : i32
    scf.if %29 {
      %c0_21 = arith.constant 0 : index
      %c0_22 = arith.constant 0 : index
      %30 = vector.load %arg10[%c0_21, %c0_22] : memref<16x128xf32, #tpu.memory_space<vmem>>, vector<16x128xf32>
      %c0_23 = arith.constant 0 : index
      %c0_24 = arith.constant 0 : index
      %31 = vector.load %arg8[%c0_23, %c0_24] : memref<1x128xf32, #tpu.memory_space<vmem>>, vector<1x128xf32>
      %32 = vector.broadcast %31 : vector<1x128xf32> to vector<16x128xf32>
      %33 = arith.addf %30, %32 : vector<16x128xf32>
      %c0_25 = arith.constant 0 : index
      %c0_26 = arith.constant 0 : index
      %34 = vector.load %arg9[%c0_25, %c0_26] : memref<16x128xf32, #tpu.memory_space<vmem>>, vector<16x128xf32>
      tpu.vector_store %arg9[%c0_25, %c0_26], %33 {strides = array<i32>} : memref<16x128xf32, #tpu.memory_space<vmem>>, vector<16x128xf32>,
    } else {
    }
    return
  }
  func.func @transform_0(%arg0: i32, %arg1: i32) -> (i32, i32) {
    %c0_i32 = arith.constant 0 : i32
    %c0_i32_0 = arith.constant 0 : i32
    return %arg0, %c0_i32 : i32, i32
  }
  func.func @transform_1(%arg0: i32, %arg1: i32) -> (i32, i32) {
    %c0_i32 = arith.constant 0 : i32
    %c0_i32_0 = arith.constant 0 : i32
    return %c0_i32, %arg1 : i32, i32
  }
  func.func @transform_2(%arg0: i32, %arg1: i32) -> (i32, i32) {
    %c0_i32 = arith.constant 0 : i32
    %c0_i32_0 = arith.constant 0 : i32
    return %c0_i32, %arg1 : i32, i32
  }
  func.func @transform_3(%arg0: i32, %arg1: i32) -> (i32, i32) {
    %c0_i32 = arith.constant 0 : i32
    %c0_i32_0 = arith.constant 0 : i32
    return %c0_i32, %arg1 : i32, i32
  }
  func.func @transform_4(%arg0: i32, %arg1: i32) -> (i32, i32) {
    %c0_i32 = arith.constant 0 : i32
    %c0_i32_0 = arith.constant 0 : i32
    return %c0_i32, %arg1 : i32, i32
  }
  func.func @transform_5(%arg0: i32, %arg1: i32) -> (i32, i32) {
    %c0_i32 = arith.constant 0 : i32
    %c0_i32_0 = arith.constant 0 : i32
    return %arg1, %c0_i32 : i32, i32
  }
  func.func @transform_6(%arg0: i32, %arg1: i32) -> (i32, i32) {
    %c0_i32 = arith.constant 0 : i32
    %c0_i32_0 = arith.constant 0 : i32
    %c0_i32_1 = arith.constant 0 : i32
    return %c0_i32, %c0_i32_0 : i32, i32
  }
  func.func @transform_7(%arg0: i32, %arg1: i32) -> (i32, i32) {
    %c0_i32 = arith.constant 0 : i32
    %c0_i32_0 = arith.constant 0 : i32
    return %arg0, %c0_i32 : i32, i32
  }
}

</mosaic_0001>

<bundles_post_ra>
// kernel: glu_feed_forward_padded.1
= control target key start
LH: loop header
LB: loop body
LE: loop exit
PB: predicated region body
PF: predicated region fallthrough
CT: control target
= control target key end

     0   :  { %12 = vsyncpa [#allocation4], 0  ;;  %s1075_s0 = inlined_call_operand.hbm [shape: bf16[16,128], index: 0, kind: input, shape index: {}]   ;;  %s1076_s1 = inlined_call_operand.hbm [shape: bf16[128,128], index: 1, kind: input, shape index: {}]   ;;  %s1077_s2 = inlined_call_operand.hbm [shape: f32[1,128], index: 2, kind: input, shape index: {}]   ;;  %s1078_s3 = inlined_call_operand.hbm [shape: bf16[128,128], index: 3, kind: input, shape index: {}]   ;;  %s1079_s4 = inlined_call_operand.hbm [shape: f32[1,128], index: 4, kind: input, shape index: {}]   ;;  %s1080_s5 = inlined_call_operand.hbm [shape: bf16[128,128], index: 5, kind: input, shape index: {}]   ;;  %s1081_s6 = inlined_call_operand.hbm [shape: f32[1,128], index: 6, kind: input, shape index: {}]   ;;  %s1082_s7 = inlined_call_operand.hbm [shape: f32[16,128], index: 7, kind: output, shape index: {}]  }
   0x1   :  { %13 = vsyncpa [#allocation7], 0 }
   0x2   :  { %14 = vsyncpa [#allocation10], 0 }
   0x3   :  { %15 = vsyncpa [#allocation13], 0 }
   0x4   :  { %16 = vsyncpa [#allocation5], 0  ;;  %s869_s24 = smov [#allocation6]   ;;  %s870_s26 = smov [#allocation9]  }
   0x5   :  { %s34_s25 = sshll.u32 %s869_s24, 4  ;;  %s56_s27 = sshll.u32 %s870_s26, 4  ;;  %s35_s25 = int_to_ptr.vmem [resolvable:$true] %s34_s25  ;;  %s923_s27 = int_to_ptr.vmem [resolvable:$true] %s56_s27 }
   0x6   :  { %s683_s30 = scalar_lea.hbm %s1076_s1, 1024 }
   0x7   :  { %p684_p0 = scmp.ne.s32.totalorder %s1076_s1, %s683_s30  ;;  %p687_p1 = scmp.lt.u32.totalorder %s683_s30, %s1076_s1 }
   0x9   :  { %p689_p2 = pnand %p687_p1, %p684_p0 }
   0xb   :  { %692 = shalt.err (!%p689_p2)
}
   0xc   :  { %s693_s12 = scalar_lea.vmem %s35_s25, 1024  ;;  %p698_p4 = scmp.lt.s32.totalorder %s35_s25, %s35_s25 }
   0xd   :  { %p694_p3 = scmp.ne.s32.totalorder %s35_s25, %s693_s12  ;;  %p699_p5 = scmp.lt.s32.totalorder %s693_s12, %s693_s12 }
   0xf   :  { %p700_p6 = por %p699_p5, %p698_p4 }
  0x11   :  { %p701_p7 = pnand %p700_p6, %p694_p3 }
  0x13   :  { %704 = shalt.err (!%p701_p7)
}
  0x14   :  { %s871_s13 = smov 64   ;;  %s872_s14 = smov 4  }
  0x15   :  { %40 = dma.hbm_to_vmem [thread:$0]  %s1076_s1, 1024, %s35_s25, [#allocation7], %s871_s13, %s871_s13, %s872_s14  }
  0x16   :  { %s705_s19 = scalar_lea.hbm %s1078_s3, 1024 }
  0x17   :  { %p706_p8 = scmp.ne.s32.totalorder %s1078_s3, %s705_s19  ;;  %p709_p9 = scmp.lt.u32.totalorder %s705_s19, %s1078_s3 }
  0x19   :  { %p711_p10 = pnand %p709_p9, %p706_p8 }
  0x1b   :  { %714 = shalt.err (!%p711_p10)
}
  0x1c   :  { %s715_s24 = scalar_lea.vmem %s923_s27, 1024  ;;  %p720_p12 = scmp.lt.s32.totalorder %s923_s27, %s923_s27 }
  0x1d   :  { %p716_p11 = scmp.ne.s32.totalorder %s923_s27, %s715_s24  ;;  %p721_p13 = scmp.lt.s32.totalorder %s715_s24, %s715_s24 }
  0x1f   :  { %p722_p0 = por %p721_p13, %p720_p12 }
  0x21   :  { %p723_p1 = pnand %p722_p0, %p716_p11 }
  0x23   :  { %726 = shalt.err (!%p723_p1)
}
  0x24   :  { %62 = dma.hbm_to_vmem [thread:$0]  %s1078_s3, 1024, %s923_s27, [#allocation10], %s871_s13, %s871_s13, %s872_s14  }
  0x25   :  { %s873_s26 = smov [#allocation12]   ;;  %s874_s29 = smov [#allocation3]  }
  0x26   :  { %s78_s28 = sshll.u32 %s873_s26, 4  ;;  %s22_s30 = sshll.u32 %s874_s29, 4  ;;  %s79_s28 = int_to_ptr.vmem [resolvable:$true] %s78_s28  ;;  %s960_s30 = int_to_ptr.vmem [resolvable:$true] %s22_s30 }
  0x27   :  { %s727_s10 = scalar_lea.hbm %s1080_s5, 1024 }
  0x28   :  { %p728_p2 = scmp.ne.s32.totalorder %s1080_s5, %s727_s10  ;;  %p731_p3 = scmp.lt.u32.totalorder %s727_s10, %s1080_s5 }
  0x2a   :  { %p733_p4 = pnand %p731_p3, %p728_p2 }
  0x2c   :  { %736 = shalt.err (!%p733_p4)
}
  0x2d   :  { %s737_s3 = scalar_lea.vmem %s79_s28, 1024  ;;  %p742_p6 = scmp.lt.s32.totalorder %s79_s28, %s79_s28 }
  0x2e   :  { %p738_p5 = scmp.ne.s32.totalorder %s79_s28, %s737_s3  ;;  %p743_p7 = scmp.lt.s32.totalorder %s737_s3, %s737_s3 }
  0x30   :  { %p744_p8 = por %p743_p7, %p742_p6 }
  0x32   :  { %p745_p9 = pnand %p744_p8, %p738_p5 }
  0x34   :  { %748 = shalt.err (!%p745_p9)
}
  0x35   :  { %84 = dma.hbm_to_vmem [thread:$0]  %s1080_s5, 1024, %s79_s28, [#allocation13], %s871_s13, %s871_s13, %s872_s14  }
  0x36   :  { %s749_s20 = scalar_lea.hbm %s1075_s0, 128 }
  0x37   :  { %p750_p10 = scmp.ne.s32.totalorder %s1075_s0, %s749_s20  ;;  %p753_p11 = scmp.lt.u32.totalorder %s749_s20, %s1075_s0 }
  0x39   :  { %p755_p12 = pnand %p753_p11, %p750_p10 }
  0x3b   :  { %758 = shalt.err (!%p755_p12)
}
  0x3c   :  { %s759_s1 = scalar_lea.vmem %s960_s30, 128  ;;  %p764_p0 = scmp.lt.s32.totalorder %s960_s30, %s960_s30 }
  0x3d   :  { %p760_p13 = scmp.ne.s32.totalorder %s960_s30, %s759_s1  ;;  %p765_p1 = scmp.lt.s32.totalorder %s759_s1, %s759_s1 }
  0x3f   :  { %p766_p2 = por %p765_p1, %p764_p0 }
  0x41   :  { %p767_p3 = pnand %p766_p2, %p760_p13 }
  0x43   :  { %770 = shalt.err (!%p767_p3)
}
  0x44   :  { %28 = dma.hbm_to_vmem [thread:$0]  %s1075_s0, 128, %s960_s30, [#allocation4], %s871_s13, %s871_s13, %s872_s14  }
  0x45   :  { %s875_s26 = smov [#allocation8]   ;;  %s876_s29 = smov [#allocation11]  }
  0x46   :  { %s47_s28 = sshll.u32 %s875_s26, 4  ;;  %s69_s8 = sshll.u32 %s876_s29, 4  ;;  %s48_s28 = int_to_ptr.vmem [resolvable:$true] %s47_s28  ;;  %s70_s8 = int_to_ptr.vmem [resolvable:$true] %s69_s8 }
  0x47   :  { %s771_s11 = scalar_lea.hbm %s1077_s2, 16 }
  0x48   :  { %p772_p4 = scmp.ne.s32.totalorder %s1077_s2, %s771_s11  ;;  %p775_p5 = scmp.lt.u32.totalorder %s771_s11, %s1077_s2 }
  0x4a   :  { %p777_p6 = pnand %p775_p5, %p772_p4 }
  0x4c   :  { %780 = shalt.err (!%p777_p6)
}
  0x4d   :  { %s781_s0 = scalar_lea.vmem %s48_s28, 16  ;;  %s785_s13 = scalar_lea.vmem %s48_s28, 32 }
  0x4e   :  { %p782_p7 = scmp.ne.s32.totalorder %s48_s28, %s781_s0  ;;  %p786_p8 = scmp.lt.s32.totalorder %s48_s28, %s48_s28 }
  0x4f   :  { %p787_p9 = scmp.lt.s32.totalorder %s785_s13, %s781_s0 }
  0x51   :  { %p788_p10 = por %p787_p9, %p786_p8 }
  0x53   :  { %p789_p11 = pnand %p788_p10, %p782_p7 }
  0x55   :  { %792 = shalt.err (!%p789_p11)
}
  0x56   :  { %50 = dma.hbm_to_vmem [thread:$0]  %s1077_s2, 16, %s48_s28, [#allocation7]  }
  0x57   :  { %s793_s18 = scalar_lea.hbm %s1079_s4, 16 }
  0x58   :  { %p794_p12 = scmp.ne.s32.totalorder %s1079_s4, %s793_s18  ;;  %p797_p13 = scmp.lt.u32.totalorder %s793_s18, %s1079_s4 }
  0x5a   :  { %p799_p0 = pnand %p797_p13, %p794_p12 }
  0x5c   :  { %802 = shalt.err (!%p799_p0)
}
  0x5d   :  { %s803_s23 = scalar_lea.vmem %s70_s8, 16  ;;  %s807_s24 = scalar_lea.vmem %s70_s8, 32 }
  0x5e   :  { %p804_p1 = scmp.ne.s32.totalorder %s70_s8, %s803_s23  ;;  %p808_p2 = scmp.lt.s32.totalorder %s70_s8, %s70_s8 }
  0x5f   :  { %p809_p3 = scmp.lt.s32.totalorder %s807_s24, %s803_s23 }
  0x61   :  { %p810_p4 = por %p809_p3, %p808_p2 }
  0x63   :  { %p811_p5 = pnand %p810_p4, %p804_p1 }
  0x65   :  { %814 = shalt.err (!%p811_p5)
}
  0x66   :  { %72 = dma.hbm_to_vmem [thread:$0]  %s1079_s4, 16, %s70_s8, [#allocation10]  }
  0x67   :  { %s877_s5 = smov [#allocation14]   ;;  %s815_s29 = scalar_lea.hbm %s1081_s6, 16 }
  0x68   :  { %s91_s25 = sshll.u32 %s877_s5, 4  ;;  %p816_p6 = scmp.ne.s32.totalorder %s1081_s6, %s815_s29  ;;  %s92_s25 = int_to_ptr.vmem [resolvable:$true] %s91_s25 }
  0x69   :  { %p819_p7 = scmp.lt.u32.totalorder %s815_s29, %s1081_s6 }
  0x6b   :  { %p821_p8 = pnand %p819_p7, %p816_p6 }
  0x6d   :  { %824 = shalt.err (!%p821_p8)
}
  0x6e   :  { %s825_s15 = scalar_lea.vmem %s92_s25, 16  ;;  %s829_s4 = scalar_lea.vmem %s92_s25, 32 }
  0x6f   :  { %p826_p9 = scmp.ne.s32.totalorder %s92_s25, %s825_s15  ;;  %p830_p10 = scmp.lt.s32.totalorder %s92_s25, %s92_s25 }
  0x70   :  { %p831_p11 = scmp.lt.s32.totalorder %s829_s4, %s825_s15 }
  0x72   :  { %p832_p12 = por %p831_p11, %p830_p10 }
  0x74   :  { %p833_p13 = pnand %p832_p12, %p826_p9 }
  0x76   :  { %836 = shalt.err (!%p833_p13)
}
  0x77   :  { %94 = dma.hbm_to_vmem [thread:$0]  %s1081_s6, 16, %s92_s25, [#allocation13]  }
  0x78   :  { %859 = dma.done.wait [#allocation4], 128  }
  0x79   :  { %860 = vsyncadd [#allocation4], 4294967168 }
  0x7a   :  { %861 = dma.done.wait [#allocation7], 1040  }
  0x7b   :  { %862 = vsyncadd [#allocation7], 4294966256 }
  0x7c   :  { %863 = dma.done.wait [#allocation10], 1040  }
  0x7d   :  { %864 = vsyncadd [#allocation10], 4294966256 }
  0x7e   :  { %865 = dma.done.wait [#allocation13], 1040  }
  0x7f   :  { %866 = vsyncadd [#allocation13], 4294966256  ;;  %v878_v0 = vmov 0.0   ;;  %vm879_vm0 = vmmov 0   ;;  %v650_v1 = vld [vmem:[#allocation6] sm:$0xff]   ;;  %v651_v2 = vld [vmem:[#allocation6 + $0x8] sm:$0xff]  }
  0x80   :  { %576 = vmatprep.subr.bf16.mxu0 %v878_v0  ;;  %596 = vmatprep.subr.bf16.mxu1 %v878_v0  ;;  %v652_v3 = vld [vmem:[#allocation6 + $0x10] sm:$0xff]   ;;  %v657_v4 = vld [vmem:[#allocation9] sm:$0xff]   ;;  %v653_v6 = vld [vmem:[#allocation6 + $0x18] sm:$0xff]   ;;  %s880_s6 = smov [#allocation15]  }
  0x81   :  { %592 = vmatprep.mubr.msk.bf16.mxu0 %vm879_vm0, %v878_v0  ;;  %612 = vmatprep.mubr.msk.bf16.mxu1 %vm879_vm0, %v878_v0  ;;  %v659_v5 = vld [vmem:[#allocation9 + $0x8] sm:$0xff]   ;;  %v661_v7 = vld [vmem:[#allocation9 + $0x10] sm:$0xff]   ;;  %v654_v8 = vld [vmem:[#allocation6 + $0x20] sm:$0xff]   ;;  %s504_s3 = sshll.u32 %s880_s6, 4  ;;  %s505_s3 = int_to_ptr.vmem [resolvable:$true] %s504_s3 }
  0x82   :  { %577 = vmatpush3.bf16.msra.mxu0 %v650_v1  ;;  %597 = vmatpush3.bf16.msra.mxu1 %v657_v4  ;;  %v655_v9 = vld [vmem:[#allocation6 + $0x28] sm:$0xff]   ;;  %v662_v10 = vld [vmem:[#allocation9 + $0x18] sm:$0xff]   ;;  %v656_v12 = vld [vmem:[#allocation6 + $0x30] sm:$0xff]   ;;  %s837_s0 = scalar_lea.vmem %s505_s3, 256  ;;  %p842_p1 = scmp.lt.s32.totalorder %s505_s3, %s505_s3 }
  0x83   :  { %578 = vmatprep.subr.bf16.mxu0 %v878_v0  ;;  %598 = vmatprep.subr.bf16.mxu1 %v878_v0  ;;  %v663_v11 = vld [vmem:[#allocation9 + $0x20] sm:$0xff]   ;;  %v664_v13 = vld [vmem:[#allocation9 + $0x28] sm:$0xff]   ;;  %v658_v14 = vld [vmem:[#allocation6 + $0x38] sm:$0xff]   ;;  %p838_p0 = scmp.ne.s32.totalorder %s505_s3, %s837_s0  ;;  %p843_p2 = scmp.lt.s32.totalorder %s837_s0, %s837_s0 }
  0x84   :  { %v660_v15 = vld [vmem:[#allocation3] sm:$0xff]   ;;  %v667_v18 = vld [vmem:[#allocation12] sm:$0xff]   ;;  %v668_v19 = vld [vmem:[#allocation12 + $0x8] sm:$0xff]  }
  0x85   :  { %v665_v16 = vld [vmem:[#allocation9 + $0x30] sm:$0xff]   ;;  %v666_v17 = vld [vmem:[#allocation9 + $0x38] sm:$0xff]   ;;  %v671_v22 = vld [vmem:[#allocation12 + $0x20] sm:$0xff]   ;;  %p844_p3 = por %p843_p2, %p842_p1 }
  0x86   :  { %579 = vmatpush3.bf16.msra.mxu0 %v651_v2  ;;  %599 = vmatpush3.bf16.msra.mxu1 %v659_v5  ;;  %v669_v20 = vld [vmem:[#allocation12 + $0x10] sm:$0xff]   ;;  %v670_v21 = vld [vmem:[#allocation12 + $0x18] sm:$0xff]   ;;  %v672_v23 = vld [vmem:[#allocation12 + $0x28] sm:$0xff]  }
  0x87   :  { %580 = vmatprep.subr.bf16.mxu0 %v878_v0  ;;  %600 = vmatprep.subr.bf16.mxu1 %v878_v0  ;;  %v673_v24 = vld [vmem:[#allocation12 + $0x30] sm:$0xff]   ;;  %v674_v25 = vld [vmem:[#allocation12 + $0x38] sm:$0xff]   ;;  %v548_v53 = vld [vmem:[#allocation14] ss:$0 sm:$0xff]  ;;  %p845_p4 = pnand %p844_p3, %p838_p0 }
  0x88   :  { %v519_v26 = vld [vmem:[#allocation8] ss:$0 sm:$0xff]  ;;  %v529_v43 = vld [vmem:[#allocation11] ss:$0 sm:$0xff] }
  0x8a   :  { %581 = vmatpush3.bf16.msra.mxu0 %v652_v3  ;;  %601 = vmatpush3.bf16.msra.mxu1 %v661_v7 }
  0x8b   :  { %582 = vmatprep.subr.bf16.mxu0 %v878_v0  ;;  %602 = vmatprep.subr.bf16.mxu1 %v878_v0 }
  0x8e   :  { %583 = vmatpush3.bf16.msra.mxu0 %v653_v6  ;;  %603 = vmatpush3.bf16.msra.mxu1 %v662_v10 }
  0x8f   :  { %584 = vmatprep.subr.bf16.mxu0 %v878_v0  ;;  %604 = vmatprep.subr.bf16.mxu1 %v878_v0 }
  0x92   :  { %585 = vmatpush3.bf16.msra.mxu0 %v654_v8  ;;  %605 = vmatpush3.bf16.msra.mxu1 %v663_v11 }
  0x93   :  { %586 = vmatprep.subr.bf16.mxu0 %v878_v0  ;;  %606 = vmatprep.subr.bf16.mxu1 %v878_v0 }
  0x96   :  { %587 = vmatpush3.bf16.msra.mxu0 %v655_v9  ;;  %607 = vmatpush3.bf16.msra.mxu1 %v664_v13 }
  0x97   :  { %588 = vmatprep.subr.bf16.mxu0 %v878_v0  ;;  %608 = vmatprep.subr.bf16.mxu1 %v878_v0 }
  0x9a   :  { %589 = vmatpush3.bf16.msra.mxu0 %v656_v12  ;;  %609 = vmatpush3.bf16.msra.mxu1 %v665_v16 }
  0x9b   :  { %590 = vmatprep.subr.bf16.mxu0 %v878_v0  ;;  %610 = vmatprep.subr.bf16.mxu1 %v878_v0 }
  0x9e   :  { %591 = vmatpush3.bf16.msra.mxu0 %v658_v14  ;;  %611 = vmatpush3.bf16.msra.mxu1 %v666_v17 }
  0x9f   :  { %616 = vmatprep.subr.bf16.mxu0 %v878_v0 }
  0xa1   :  { %593 = vmatmul.mubr.bf16.vlgmr.msra.gmra.mrb[0].mxu0 %v660_v15  ;;  %613 = vmatmul.mubr.bf16.vlgmr.msra.gmra.mrb[0].mxu1 %v660_v15 }
  0xa2   :  { %632 = vmatprep.mubr.msk.bf16.mxu0 %vm879_vm0, %v878_v0  ;;  %617 = vmatpush3.bf16.msra.mxu0 %v667_v18 }
  0xa3   :  { %618 = vmatprep.subr.bf16.mxu0 %v878_v0 }
  0xa6   :  { %619 = vmatpush3.bf16.msra.mxu0 %v668_v19 }
  0xa7   :  { %620 = vmatprep.subr.bf16.mxu0 %v878_v0 }
  0xaa   :  { %621 = vmatpush3.bf16.msra.mxu0 %v669_v20 }
  0xab   :  { %622 = vmatprep.subr.bf16.mxu0 %v878_v0 }
  0xae   :  { %623 = vmatpush3.bf16.msra.mxu0 %v670_v21 }
  0xaf   :  { %624 = vmatprep.subr.bf16.mxu0 %v878_v0 }
  0xb2   :  { %625 = vmatpush3.bf16.msra.mxu0 %v671_v22 }
  0xb3   :  { %626 = vmatprep.subr.bf16.mxu0 %v878_v0 }
  0xb6   :  { %627 = vmatpush3.bf16.msra.mxu0 %v672_v23 }
  0xb7   :  { %628 = vmatprep.subr.bf16.mxu0 %v878_v0 }
  0xba   :  { %629 = vmatpush3.bf16.msra.mxu0 %v673_v24 }
  0xbb   :  { %630 = vmatprep.subr.bf16.mxu0 %v878_v0 }
  0xbe   :  { %631 = vmatpush3.bf16.msra.mxu0 %v674_v25 }
 0x174   :  { %v236_v27 = vpop.f32.mrb[0].mxu0  ;;  %v348_v35 = vpop.f32.mrb[0].mxu1 }
 0x175   :  { %v237_v28 = vadd.f32 %v519_v26, %v236_v27  ;;  %v594_v29 = vpop.f32.mrb[1].mxu0  ;;  %v614_v36 = vpop.f32.mrb[1].mxu1  ;;  %v349_v44 = vadd.f32 %v529_v43, %v348_v35 }
 0x176   :  { %v239_v30 = vpop.f32.mrb[2].mxu0  ;;  %v351_v37 = vpop.f32.mrb[2].mxu1 }
 0x177   :  { %v538_v31 = vmul.f32 -1.442695, %v237_v28  ;;  %v240_v32 = vadd.f32 %v519_v26, %v239_v30  ;;  %v595_v33 = vpop.f32.mrb[3].mxu0  ;;  %v615_v38 = vpop.f32.mrb[3].mxu1  ;;  %v352_v50 = vadd.f32 %v529_v43, %v351_v37 }
 0x179   :  { %675 = vpow2.f32 %v538_v31  ;;  %v539_v34 = vmul.f32 -1.442695, %v240_v32 }
 0x17b   :  { %677 = vpow2.f32 %v539_v34 }
 0x183   :  { %v676_v39 = vpop.eup %675 }
 0x184   :  { %v361_v40 = vadd.f32 1.0, %v676_v39 }
 0x185   :  { %v678_v41 = vpop.eup %677 }
 0x186   :  { %679 = vrcp.f32 %v361_v40  ;;  %v362_v42 = vadd.f32 1.0, %v678_v41 }
 0x188   :  { %681 = vrcp.f32 %v362_v42 }
 0x190   :  { %v680_v45 = vpop.eup %679 }
 0x191   :  { %v367_v46 = vmul.f32 %v680_v45, %v237_v28 }
 0x192   :  { %v682_v47 = vpop.eup %681 }
 0x193   :  { %v368_v48 = vmul.f32 %v682_v47, %v240_v32  ;;  %v369_v49 = vmul.f32 %v367_v46, %v349_v44 }
 0x195   :  { %v370_v51 = vmul.f32 %v368_v48, %v352_v50 }
 0x197   :  { %v371_v52 = vpack.c.bf16 %v370_v51, %v369_v49 }
 0x199   :  { %633 = vmatmul.mubr.bf16.vlgmr.msra.gmra.mrb[4].mxu0 %v371_v52 }
 0x26c   :  { %v472_v54 = vpop.f32.mrb[4].mxu0 }
 0x26d   :  { %v495_v55 = vadd.f32 %v548_v53, %v472_v54  ;;  %v634_v56 = vpop.f32.mrb[5].mxu0 }
 0x26e   :  { %v475_v57 = vpop.f32.mrb[6].mxu0 }
 0x26f   :  { %497 = vst [vmem:[#allocation15] sm:$0xff] %v495_v55  ;;  %v496_v58 = vadd.f32 %v548_v53, %v475_v57  ;;  %v635_v59 = vpop.f32.mrb[7].mxu0 }
 0x271   :  { %498 = vst [vmem:[#allocation15 + $0x8] sm:$0xff] %v496_v58 }
 0x272   :  { %848 = shalt.err (!%p845_p4)
}
 0x273   :  { %s849_s30 = scalar_lea.hbm %s1082_s7, 256 }
 0x274   :  { %p850_p5 = scmp.ne.s32.totalorder %s1082_s7, %s849_s30  ;;  %p853_p6 = scmp.lt.u32.totalorder %s849_s30, %s1082_s7 }
 0x276   :  { %p855_p7 = pnand %p853_p6, %p850_p5 }
 0x278   :  { %858 = shalt.err (!%p855_p7)
}
 0x279   :  { %s881_s20 = smov 128   ;;  %s882_s21 = smov 8  }
 0x27a   :  { %510 = dma.vmem_to_hbm [thread:$0]  %s505_s3, 256, %s1082_s7, [#allocation5], %s881_s20, %s881_s20, %s882_s21  }
 0x27b   :  { %867 = dma.done.wait [#allocation5], 256  }
 0x27c   :  { %868 = vsyncadd [#allocation5], 4294967040 }
 0x27d   :  { %514 = vsyncpa [#allocation4], 1 }
 0x27e   :  { %515 = vsyncpa [#allocation7], 1 }
 0x27f   :  { %516 = vsyncpa [#allocation10], 1 }
 0x280   :  { %517 = vsyncpa [#allocation13], 1 }
 0x281   :  { %518 = vsyncpa [#allocation5], 1 }

</bundles_post_ra>
